<compile_context>
chip_gen: v6e
topology: v6e:2x2x1
jax: 0.10.0
libtpu: 0.0.40
codegen_flags: <defaults>
</compile_context>

<pallas_src>
import functools

import jax
import jax.numpy as jnp
from jax.experimental import pallas as pl
from jax.experimental.pallas import tpu as pltpu


def mini_actor_kernel(x_ref,           # (K, TM)  bf16
                      w1_ref, b1_ref,  # (H, K) bf16, (H, 1) f32
                      w2_ref, b2_ref,  # (H, H) bf16, (H, 1) f32
                      w3_ref, b3_ref,  # (H, H) bf16, (H, 1) f32
                      w4_ref, b4_ref,  # (1, H) bf16, (1, 1) f32 in SMEM
                      o_ref):          # (1, TM) f32
    x_t = x_ref[...]                                                   # bf16 (K, TM)

    # Layer 1: Linear + ReLU (MXU bf16, f32 accumulate; bias broadcast over lanes)
    h1 = jnp.dot(w1_ref[...], x_t, preferred_element_type=jnp.float32) + b1_ref[...]
    h1 = jnp.maximum(h1, 0.0)

    # Layer 2: Linear + ReLU
    h2 = jnp.dot(w2_ref[...], h1.astype(jnp.bfloat16),
                 preferred_element_type=jnp.float32) + b2_ref[...]
    h2 = jnp.maximum(h2, 0.0)

    # Layer 3: Linear + ReLU
    h3 = jnp.dot(w3_ref[...], h2.astype(jnp.bfloat16),
                 preferred_element_type=jnp.float32) + b3_ref[...]
    h3 = jnp.maximum(h3, 0.0)

    # Layer 4: Linear + Sigmoid (scalar bias from SMEM; exp + reciprocal on EUP)
    z = jnp.dot(w4_ref[...], h3.astype(jnp.bfloat16),
                preferred_element_type=jnp.float32) + b4_ref[0, 0]
    o_ref[...] = pl.reciprocal(1.0 + jnp.exp(-z), approx=True)


def _round_up(x, m):
    return ((x + m - 1) // m) * m


def mini_actor_forward(x, params, *, tm_max=1024):
    """x: (B, K) float32; params hold torch-layout weights (out, in) and column biases."""
    B, K = x.shape
    H = params["w1"].shape[0]

    # Lane tile: multiple of 128, no larger than needed for the batch, capped at tm_max.
    tm = min(tm_max, _round_up(B, 128))
    b_pad = _round_up(B, tm)

    # Batch -> lane dim; pad to a whole number of tiles.
    x_t = jnp.pad(x.T.astype(jnp.bfloat16), ((0, 0), (0, b_pad - B)))   # (K, b_pad)

    w1 = params["w1"].astype(jnp.bfloat16)
    w2 = params["w2"].astype(jnp.bfloat16)
    w3 = params["w3"].astype(jnp.bfloat16)
    w4 = params["w4"].astype(jnp.bfloat16)
    b1, b2, b3, b4 = params["b1"], params["b2"], params["b3"], params["b4"]

    grid = (b_pad // tm,)

    out = pl.pallas_call(
        mini_actor_kernel,
        out_shape=jax.ShapeDtypeStruct((1, b_pad), jnp.float32),
        grid=grid,
        in_specs=[
            pl.BlockSpec((K, tm), lambda i: (0, i)),        # x stream: pipelined over batch
            pl.BlockSpec((H, K), lambda i: (0, 0)),         # weights/biases: VMEM-resident
            pl.BlockSpec((H, 1), lambda i: (0, 0)),
            pl.BlockSpec((H, H), lambda i: (0, 0)),
            pl.BlockSpec((H, 1), lambda i: (0, 0)),
            pl.BlockSpec((H, H), lambda i: (0, 0)),
            pl.BlockSpec((H, 1), lambda i: (0, 0)),
            pl.BlockSpec((1, H), lambda i: (0, 0)),
            pl.BlockSpec(memory_space=pltpu.MemorySpace.SMEM),  # scalar b4
        ],
        out_specs=pl.BlockSpec((1, tm), lambda i: (0, i)),  # lane-dense output slab
        compiler_params=pltpu.CompilerParams(
            dimension_semantics=("parallel",)),
    )(x_t, w1, b1, w2, b2, w3, b3, w4, b4)

    return out[:, :B].T                                     # (B, 1) float32


def init_params(key, k_classes_input, n_hidden_units):
    """Deterministic synthetic init; torch Linear layout: W (out, in), b as column (out, 1)."""
    ks = jax.random.split(key, 8)

    def lin(kw, kb, fan_in, fan_out):
        bound = 1.0 / jnp.sqrt(fan_in)
        w = jax.random.uniform(kw, (fan_out, fan_in), jnp.float32, -bound, bound)
        b = jax.random.uniform(kb, (fan_out, 1), jnp.float32, -bound, bound)
        return w, b

    w1, b1 = lin(ks[0], ks[1], k_classes_input, n_hidden_units)
    w2, b2 = lin(ks[2], ks[3], n_hidden_units, n_hidden_units)
    w3, b3 = lin(ks[4], ks[5], n_hidden_units, n_hidden_units)
    w4, b4 = lin(ks[6], ks[7], n_hidden_units, 1)
    return {"w1": w1, "b1": b1, "w2": w2, "b2": b2,
            "w3": w3, "b3": b3, "w4": w4, "b4": b4}


def reference_forward(x, p):
    """Pure-JAX f32 reference with torch Linear semantics: y = x @ W.T + b."""
    h1 = jnp.maximum(x @ p["w1"].T + p["b1"].T, 0.0)
    h2 = jnp.maximum(h1 @ p["w2"].T + p["b2"].T, 0.0)
    h3 = jnp.maximum(h2 @ p["w3"].T + p["b3"].T, 0.0)
    return jax.nn.sigmoid(h3 @ p["w4"].T + p["b4"].T)


if __name__ == "__main__":
    key = jax.random.PRNGKey(0)
    k_x, k_p, k_big = jax.random.split(key, 3)

    batch = 8
    k_classes_input = 16
    n_hidden_units = 32

    params = init_params(k_p, k_classes_input, n_hidden_units)

    # Small case (matches the module's intended tiny workload). Tile adapts to 128 lanes.
    x = jax.random.normal(k_x, (batch, k_classes_input), jnp.float32)
    out = jax.block_until_ready(mini_actor_forward(x, params))
    ref = reference_forward(x, params)
    assert out.shape == (batch, 1), out.shape
    assert jnp.allclose(out, ref, atol=2e-2, rtol=2e-2), "small-batch mismatch vs reference"

    # Larger, non-multiple-of-tile batch to exercise the pipelined batch grid.
    x_big = jax.random.normal(k_big, (1061, k_classes_input), jnp.float32)
    out_big = jax.block_until_ready(mini_actor_forward(x_big, params))
    ref_big = reference_forward(x_big, params)
    assert out_big.shape == (1061, 1), out_big.shape
    assert jnp.allclose(out_big, ref_big, atol=2e-2, rtol=2e-2), "large-batch mismatch vs reference"

    print("KERNEL_OK")
</pallas_src>

<mosaic_0001>
module attributes {stable_mosaic.version = 11 : i64} {
  func.func @mini_actor_kernel(%arg0: i32, %arg1: memref<16x128xbf16, #tpu.memory_space<vmem>>, %arg2: memref<32x16xbf16, #tpu.memory_space<vmem>>, %arg3: memref<32x1xf32, #tpu.memory_space<vmem>>, %arg4: memref<32x32xbf16, #tpu.memory_space<vmem>>, %arg5: memref<32x1xf32, #tpu.memory_space<vmem>>, %arg6: memref<32x32xbf16, #tpu.memory_space<vmem>>, %arg7: memref<32x1xf32, #tpu.memory_space<vmem>>, %arg8: memref<1x32xbf16, #tpu.memory_space<vmem>>, %arg9: memref<1x1xf32, #tpu.memory_space<smem>>, %arg10: memref<1x128xf32, #tpu.memory_space<vmem>>) attributes {dimension_semantics = [#tpu.dimension_semantics<parallel>], iteration_bounds = array<i64: 1>, scalar_prefetch = 0 : i64, scratch_operands = 0 : i64, tpu.core_type = #tpu.core_type<tc>, window_params = [{transform_indices = @transform_0, window_bounds = array<i64: 16, 128>}, {pipeline_mode = #tpu.pipeline_mode<synchronous>, transform_indices = @transform_1, window_bounds = array<i64: 32, 16>}, {pipeline_mode = #tpu.pipeline_mode<synchronous>, transform_indices = @transform_2, window_bounds = array<i64: 32, 1>}, {pipeline_mode = #tpu.pipeline_mode<synchronous>, transform_indices = @transform_3, window_bounds = array<i64: 32, 32>}, {pipeline_mode = #tpu.pipeline_mode<synchronous>, transform_indices = @transform_4, window_bounds = array<i64: 32, 1>}, {pipeline_mode = #tpu.pipeline_mode<synchronous>, transform_indices = @transform_5, window_bounds = array<i64: 32, 32>}, {pipeline_mode = #tpu.pipeline_mode<synchronous>, transform_indices = @transform_6, window_bounds = array<i64: 32, 1>}, {pipeline_mode = #tpu.pipeline_mode<synchronous>, transform_indices = @transform_7, window_bounds = array<i64: 1, 32>}, {transform_indices = @transform_8, window_bounds = array<i64: 1, 1>}, {transform_indices = @transform_9, window_bounds = array<i64: 1, 128>}]} {
    %c0 = arith.constant 0 : index
    %c0_0 = arith.constant 0 : index
    %0 = vector.load %arg1[%c0, %c0_0] : memref<16x128xbf16, #tpu.memory_space<vmem>>, vector<16x128xbf16>
    %c0_1 = arith.constant 0 : index
    %c0_2 = arith.constant 0 : index
    %1 = vector.load %arg2[%c0_1, %c0_2] : memref<32x16xbf16, #tpu.memory_space<vmem>>, vector<32x16xbf16>
    %cst = arith.constant dense<0.000000e+00> : vector<32x128xf32>
    %2 = tpu.matmul %1, %0, %cst {dimension_numbers = #tpu.dot_dimension_numbers<[1], [0], [0], [1], [0, 0, 1, 1], [], []>} : vector<32x16xbf16>, vector<16x128xbf16>, vector<32x128xf32> -> vector<32x128xf32>
    %c0_3 = arith.constant 0 : index
    %c0_4 = arith.constant 0 : index
    %3 = vector.load %arg3[%c0_3, %c0_4] : memref<32x1xf32, #tpu.memory_space<vmem>>, vector<32x1xf32>
    %4 = vector.broadcast %3 : vector<32x1xf32> to vector<32x128xf32>
    %5 = arith.addf %2, %4 : vector<32x128xf32>
    %cst_5 = arith.constant 0.000000e+00 : f32
    %6 = vector.broadcast %cst_5 : f32 to vector<32x128xf32>
    %7 = arith.maximumf %5, %6 : vector<32x128xf32>
    %c0_6 = arith.constant 0 : index
    %c0_7 = arith.constant 0 : index
    %8 = vector.load %arg4[%c0_6, %c0_7] : memref<32x32xbf16, #tpu.memory_space<vmem>>, vector<32x32xbf16>
    %9 = arith.truncf %7 : vector<32x128xf32> to vector<32x128xbf16>
    %cst_8 = arith.constant dense<0.000000e+00> : vector<32x128xf32>
    %10 = tpu.matmul %8, %9, %cst_8 {dimension_numbers = #tpu.dot_dimension_numbers<[1], [0], [0], [1], [0, 0, 1, 1], [], []>} : vector<32x32xbf16>, vector<32x128xbf16>, vector<32x128xf32> -> vector<32x128xf32>
    %c0_9 = arith.constant 0 : index
    %c0_10 = arith.constant 0 : index
    %11 = vector.load %arg5[%c0_9, %c0_10] : memref<32x1xf32, #tpu.memory_space<vmem>>, vector<32x1xf32>
    %12 = vector.broadcast %11 : vector<32x1xf32> to vector<32x128xf32>
    %13 = arith.addf %10, %12 : vector<32x128xf32>
    %cst_11 = arith.constant 0.000000e+00 : f32
    %14 = vector.broadcast %cst_11 : f32 to vector<32x128xf32>
    %15 = arith.maximumf %13, %14 : vector<32x128xf32>
    %c0_12 = arith.constant 0 : index
    %c0_13 = arith.constant 0 : index
    %16 = vector.load %arg6[%c0_12, %c0_13] : memref<32x32xbf16, #tpu.memory_space<vmem>>, vector<32x32xbf16>
    %17 = arith.truncf %15 : vector<32x128xf32> to vector<32x128xbf16>
    %cst_14 = arith.constant dense<0.000000e+00> : vector<32x128xf32>
    %18 = tpu.matmul %16, %17, %cst_14 {dimension_numbers = #tpu.dot_dimension_numbers<[1], [0], [0], [1], [0, 0, 1, 1], [], []>} : vector<32x32xbf16>, vector<32x128xbf16>, vector<32x128xf32> -> vector<32x128xf32>
    %c0_15 = arith.constant 0 : index
    %c0_16 = arith.constant 0 : index
    %19 = vector.load %arg7[%c0_15, %c0_16] : memref<32x1xf32, #tpu.memory_space<vmem>>, vector<32x1xf32>
    %20 = vector.broadcast %19 : vector<32x1xf32> to vector<32x128xf32>
    %21 = arith.addf %18, %20 : vector<32x128xf32>
    %cst_17 = arith.constant 0.000000e+00 : f32
    %22 = vector.broadcast %cst_17 : f32 to vector<32x128xf32>
    %23 = arith.maximumf %21, %22 : vector<32x128xf32>
    %c0_18 = arith.constant 0 : index
    %c0_19 = arith.constant 0 : index
    %24 = vector.load %arg8[%c0_18, %c0_19] : memref<1x32xbf16, #tpu.memory_space<vmem>>, vector<1x32xbf16>
    %25 = arith.truncf %23 : vector<32x128xf32> to vector<32x128xbf16>
    %cst_20 = arith.constant dense<0.000000e+00> : vector<1x128xf32>
    %26 = tpu.matmul %24, %25, %cst_20 {dimension_numbers = #tpu.dot_dimension_numbers<[1], [0], [0], [1], [0, 0, 1, 1], [], []>} : vector<1x32xbf16>, vector<32x128xbf16>, vector<1x128xf32> -> vector<1x128xf32>
    %c0_21 = arith.constant 0 : index
    %c0_22 = arith.constant 0 : index
    %27 = memref.load %arg9[%c0_21, %c0_22] : memref<1x1xf32, #tpu.memory_space<smem>>
    %28 = vector.broadcast %27 : f32 to vector<1x128xf32>
    %29 = arith.addf %26, %28 : vector<1x128xf32>
    %cst_23 = arith.constant 0.000000e+00 : f32
    %30 = vector.broadcast %cst_23 : f32 to vector<1x128xf32>
    %31 = arith.subf %30, %29 : vector<1x128xf32>
    %32 = math.exp %31 : vector<1x128xf32>
    %cst_24 = arith.constant 1.000000e+00 : f32
    %33 = vector.broadcast %cst_24 : f32 to vector<1x128xf32>
    %34 = arith.addf %33, %32 : vector<1x128xf32>
    %35 = tpu.reciprocal %34 {approx = true} : vector<1x128xf32> -> vector<1x128xf32>
    %c0_25 = arith.constant 0 : index
    %c0_26 = arith.constant 0 : index
    %36 = vector.load %arg10[%c0_25, %c0_26] : memref<1x128xf32, #tpu.memory_space<vmem>>, vector<1x128xf32>
    tpu.vector_store %arg10[%c0_25, %c0_26], %35 {strides = array<i32>} : memref<1x128xf32, #tpu.memory_space<vmem>>, vector<1x128xf32>,
    return
  }
  func.func @transform_0(%arg0: i32) -> (i32, i32) {
    %c0_i32 = arith.constant 0 : i32
    %c0_i32_0 = arith.constant 0 : i32
    return %c0_i32, %arg0 : i32, i32
  }
  func.func @transform_1(%arg0: i32) -> (i32, i32) {
    %c0_i32 = arith.constant 0 : i32
    %c0_i32_0 = arith.constant 0 : i32
    %c0_i32_1 = arith.constant 0 : i32
    return %c0_i32, %c0_i32_0 : i32, i32
  }
  func.func @transform_2(%arg0: i32) -> (i32, i32) {
    %c0_i32 = arith.constant 0 : i32
    %c0_i32_0 = arith.constant 0 : i32
    %c0_i32_1 = arith.constant 0 : i32
    return %c0_i32, %c0_i32_0 : i32, i32
  }
  func.func @transform_3(%arg0: i32) -> (i32, i32) {
    %c0_i32 = arith.constant 0 : i32
    %c0_i32_0 = arith.constant 0 : i32
    %c0_i32_1 = arith.constant 0 : i32
    return %c0_i32, %c0_i32_0 : i32, i32
  }
  func.func @transform_4(%arg0: i32) -> (i32, i32) {
    %c0_i32 = arith.constant 0 : i32
    %c0_i32_0 = arith.constant 0 : i32
    %c0_i32_1 = arith.constant 0 : i32
    return %c0_i32, %c0_i32_0 : i32, i32
  }
  func.func @transform_5(%arg0: i32) -> (i32, i32) {
    %c0_i32 = arith.constant 0 : i32
    %c0_i32_0 = arith.constant 0 : i32
    %c0_i32_1 = arith.constant 0 : i32
    return %c0_i32, %c0_i32_0 : i32, i32
  }
  func.func @transform_6(%arg0: i32) -> (i32, i32) {
    %c0_i32 = arith.constant 0 : i32
    %c0_i32_0 = arith.constant 0 : i32
    %c0_i32_1 = arith.constant 0 : i32
    return %c0_i32, %c0_i32_0 : i32, i32
  }
  func.func @transform_7(%arg0: i32) -> (i32, i32) {
    %c0_i32 = arith.constant 0 : i32
    %c0_i32_0 = arith.constant 0 : i32
    %c0_i32_1 = arith.constant 0 : i32
    return %c0_i32, %c0_i32_0 : i32, i32
  }
  func.func @transform_8(%arg0: i32) -> (i32, i32) {
    %c0_i32 = arith.constant 0 : i32
    %c0_i32_0 = arith.constant 0 : i32
    %c0_i32_1 = arith.constant 0 : i32
    return %c0_i32, %c0_i32_0 : i32, i32
  }
  func.func @transform_9(%arg0: i32) -> (i32, i32) {
    %c0_i32 = arith.constant 0 : i32
    %c0_i32_0 = arith.constant 0 : i32
    return %c0_i32, %arg0 : i32, i32
  }
}

</mosaic_0001>

<bundles_post_ra>
// kernel: tpu_custom_call.1
= control target key start
LH: loop header
LB: loop body
LE: loop exit
PB: predicated region body
PF: predicated region fallthrough
CT: control target
= control target key end

     0   :  { %vm81_vm0 = vcmask 130048   ;;  %v505_v3 = vmov 0   ;;  %s630_s0 = inlined_call_operand.vmem [shape: bf16[16,128], index: 0, kind: input, shape index: {}]   ;;  %s631_s1 = inlined_call_operand.vmem [shape: bf16[32,16], index: 1, kind: input, shape index: {}]   ;;  %s632_s2 = inlined_call_operand.vmem [shape: f32[32,1], index: 2, kind: input, shape index: {}]   ;;  %s633_s3 = inlined_call_operand.vmem [shape: bf16[32,32], index: 3, kind: input, shape index: {}]   ;;  %s634_s4 = inlined_call_operand.vmem [shape: f32[32,1], index: 4, kind: input, shape index: {}]   ;;  %s635_s5 = inlined_call_operand.vmem [shape: bf16[32,32], index: 5, kind: input, shape index: {}]   ;;  %s636_s6 = inlined_call_operand.vmem [shape: f32[32,1], index: 6, kind: input, shape index: {}]   ;;  %s637_s7 = inlined_call_operand.vmem [shape: bf16[1,32], index: 7, kind: input, shape index: {}]   ;;  %s638_s8 = inlined_call_operand.<no memory space> [shape: f32[1,1], index: 8, kind: input, shape index: {}]   ;;  %s639_s9 = inlined_call_operand.hbm [shape: f32[1,128], index: 9, kind: output, shape index: {}]  }
   0x1   :  { %v472_v0 = vld [vmem:[%s630_s0] sm:$0xff]   ;;  %v474_v2 = vld [vmem:[%s631_s1 + $0x8] sm:$0xff]   ;;  %470 = vset.pattern.permute.xlu0 %v505_v3  ;;  %v43_v4 = vld [vmem:[%s632_s2 + $0x10] sm:$0xff]  ;;  %471 = vset.pattern.permute.xlu1 %v505_v3 }
   0x2   :  { %v473_v1 = vld [vmem:[%s631_s1] sm:$0xff]   ;;  %436 = vmatprep.subr.bf16.mxu0 %v472_v0  ;;  %57 = vperm.xlu0 %470, %v43_v4   ;;  %v44_v6 = vld [vmem:[%s632_s2 + $0x18] sm:$0xff]  ;;  %v42_v7 = vld [vmem:[%s632_s2 + $0x8] sm:$0xff] }
   0x3   :  { %437 = vmatpush3.bf16.msra.mxu0 %v472_v0  ;;  %438 = vmatprep.mubr.msk.bf16.mxu0 %vm81_vm0, %v473_v1  ;;  %v41_v5 = vld [vmem:[%s632_s2] sm:$0xff]  ;;  %v149_v8 = vld [vmem:[%s634_s4 + $0x10] sm:$0xff] }
   0x4   :  { %47 = vperm.xlu1 %471, %v41_v5  }
   0x6   :  { %439 = vmatmul.mubr.msk.bf16.vlgmr.msra.gmra.mxu0 %vm81_vm0, %v474_v2  ;;  %62 = vperm.xlu0 %470, %v44_v6  }
   0x8   :  { %52 = vperm.xlu1 %471, %v42_v7  }
   0x9   :  { %15 = vsyncpa [#allocation4], 0  ;;  %v150_v9 = vld [vmem:[%s634_s4 + $0x18] sm:$0xff]  ;;  %v147_v10 = vld [vmem:[%s634_s4] sm:$0xff]  ;;  %vm181_vm1 = vcmask 261120   ;;  %v506_v56 = vmov 0.0  }
   0xa   :  { %163 = vperm.xlu0 %470, %v149_v8   ;;  %v148_v11 = vld [vmem:[%s634_s4 + $0x8] sm:$0xff]  ;;  %v249_v12 = vld [vmem:[%s636_s6 + $0x10] sm:$0xff]  ;;  %v250_v13 = vld [vmem:[%s636_s6 + $0x18] sm:$0xff]  ;;  %vm507_vm2 = vmmov 0   ;;  %s508_s21 = smov [#allocation3]  }
   0xb   :  { %v247_v14 = vld [vmem:[%s636_s6] sm:$0xff]  ;;  %v248_v15 = vld [vmem:[%s636_s6 + $0x8] sm:$0xff]  ;;  %s400_s22 = sshll.u32 %s508_s21, 4  ;;  %s401_s22 = int_to_ptr.vmem [resolvable:$true] %s400_s22 }
   0xc   :  { %168 = vperm.xlu1 %471, %v150_v9   ;;  %v475_v16 = vld [vmem:[%s633_s3] sm:$0xff]   ;;  %v476_v35 = vld [vmem:[%s633_s3 + $0x8] sm:$0xff]   ;;  %s487_s23 = scalar_lea.vmem %s401_s22, 32  ;;  %p488_p1 = scmp.lt.s32.totalorder %s401_s22, %s401_s22 }
   0xd   :  { %446 = vmatprep.mubr.msk.bf16.mxu1 %vm181_vm1, %v475_v16  ;;  %v477_v36 = vld [vmem:[%s635_s5] sm:$0xff]   ;;  %v478_v55 = vld [vmem:[%s635_s5 + $0x8] sm:$0xff]  }
   0xe   :  { %153 = vperm.xlu0 %470, %v147_v10   ;;  %454 = vmatprep.mubr.msk.bf16.mxu0 %vm181_vm1, %v477_v36 }
  0x10   :  { %158 = vperm.xlu1 %471, %v148_v11   ;;  %v340_v11 = vld [vmem:[%s637_s7] sm:$0x1]  ;;  %s483_s7 = scalar_lea.vmem %s401_s22, 16 }
  0x11   :  { %p484_p0 = scmp.ne.s32.totalorder %s401_s22, %s483_s7  ;;  %p489_p2 = scmp.lt.s32.totalorder %s487_s23, %s483_s7 }
  0x12   :  { %263 = vperm.xlu0 %470, %v249_v12   ;;  %v344_v12 = vstv %s638_s8 }
  0x13   :  { %p490_p3 = por %p489_p2, %p488_p1 }
  0x14   :  { %268 = vperm.xlu1 %471, %v250_v13  }
  0x15   :  { %p491_p4 = pnand %p490_p3, %p484_p0 }
  0x16   :  { %253 = vperm.xlu0 %470, %v247_v14  }
  0x18   :  { %258 = vperm.xlu1 %471, %v248_v15  }
  0x7d   :  { %v58_v17 = vpop.permute.xlu0 %57 }
  0x7f   :  { %v48_v18 = vpop.permute.xlu1 %47 }
  0x81   :  { %v63_v22 = vpop.permute.xlu0 %62 }
  0x83   :  { %v53_v26 = vpop.permute.xlu1 %52 }
  0x85   :  { %v164_v37 = vpop.permute.xlu0 %163 }
  0x87   :  { %v169_v38 = vpop.permute.xlu1 %168 }
  0x89   :  { %v154_v42 = vpop.permute.xlu0 %153 }
  0x8b   :  { %v159_v46 = vpop.permute.xlu1 %158 }
  0x8d   :  { %v264_v57 = vpop.permute.xlu0 %263 }
  0x8f   :  { %v269_v58 = vpop.permute.xlu1 %268 }
  0x91   :  { %v254_v63 = vpop.permute.xlu0 %253 }
  0x93   :  { %v259_v1 = vpop.permute.xlu1 %258 }
  0xc6   :  { %v440_v19 = vpop.f32.mrf.mxu0 }
  0xc7   :  { %v131_v21 = vadd.f32 %v440_v19, %v58_v17 }
  0xc8   :  { %v122_v20 = vpop.f32.mrf.mxu0 }
  0xc9   :  { %v123_v24 = vadd.f32 %v122_v20, %v48_v18  ;;  %v139_v28 = vmax.f32 %v131_v21, 0.0 }
  0xca   :  { %v441_v23 = vpop.f32.mrf.mxu0 }
  0xcb   :  { %v134_v25 = vadd.f32 %v441_v23, %v63_v22  ;;  %v137_v31 = vmax.f32 %v123_v24, 0.0 }
  0xcc   :  { %v125_v27 = vpop.f32.mrf.mxu0 }
  0xcd   :  { %v140_v29 = vmax.f32 %v134_v25, 0.0  ;;  %v126_v30 = vadd.f32 %v125_v27, %v53_v26 }
  0xcf   :  { %v138_v32 = vmax.f32 %v126_v30, 0.0  ;;  %v146_v33 = vpack.c.bf16 %v140_v29, %v139_v28 }
  0xd1   :  { %v145_v34 = vpack.c.bf16 %v138_v32, %v137_v31  ;;  %442 = vmatprep.subr.bf16.mxu1 %v146_v33 }
  0xd2   :  { %443 = vmatpush3.bf16.msra.mxu1 %v146_v33 }
  0xd3   :  { %444 = vmatprep.subr.bf16.mxu1 %v145_v34 }
  0xd6   :  { %445 = vmatpush3.bf16.msra.mxu1 %v145_v34 }
  0xd7   :  { %458 = vmatprep.subr.bf16.mxu1 %v506_v56 }
  0xd9   :  { %447 = vmatmul.mubr.msk.bf16.vlgmr.msra.gmra.mxu1 %vm181_vm1, %v476_v35 }
  0xda   :  { %462 = vmatprep.mubr.msk.bf16.mxu1 %vm507_vm2, %v506_v56 }
 0x199   :  { %v448_v39 = vpop.f32.mrf.mxu1 }
 0x19a   :  { %v231_v41 = vadd.f32 %v448_v39, %v164_v37 }
 0x19b   :  { %v222_v40 = vpop.f32.mrf.mxu1 }
 0x19c   :  { %v223_v44 = vadd.f32 %v222_v40, %v154_v42  ;;  %v239_v48 = vmax.f32 %v231_v41, 0.0 }
 0x19d   :  { %v449_v43 = vpop.f32.mrf.mxu1 }
 0x19e   :  { %v234_v45 = vadd.f32 %v449_v43, %v169_v38  ;;  %v237_v51 = vmax.f32 %v223_v44, 0.0 }
 0x19f   :  { %v225_v47 = vpop.f32.mrf.mxu1 }
 0x1a0   :  { %v240_v49 = vmax.f32 %v234_v45, 0.0  ;;  %v226_v50 = vadd.f32 %v225_v47, %v159_v46 }
 0x1a2   :  { %v246_v52 = vpack.c.bf16 %v240_v49, %v239_v48  ;;  %v238_v53 = vmax.f32 %v226_v50, 0.0 }
 0x1a4   :  { %v245_v54 = vpack.c.bf16 %v238_v53, %v237_v51  ;;  %450 = vmatprep.subr.bf16.mxu0 %v246_v52 }
 0x1a5   :  { %451 = vmatpush3.bf16.msra.mxu0 %v246_v52 }
 0x1a6   :  { %452 = vmatprep.subr.bf16.mxu0 %v245_v54 }
 0x1a9   :  { %453 = vmatpush3.bf16.msra.mxu0 %v245_v54 }
 0x1ac   :  { %455 = vmatmul.mubr.msk.bf16.vlgmr.msra.gmra.mxu0 %vm181_vm1, %v478_v55 }
 0x26c   :  { %v456_v59 = vpop.f32.mrf.mxu0 }
 0x26d   :  { %v330_v61 = vadd.f32 %v456_v59, %v264_v57 }
 0x26e   :  { %v321_v60 = vpop.f32.mrf.mxu0 }
 0x26f   :  { %v338_v3 = vmax.f32 %v330_v61, 0.0  ;;  %v322_v4 = vadd.f32 %v321_v60, %v254_v63 }
 0x270   :  { %v457_v62 = vpop.f32.mrf.mxu0 }
 0x271   :  { %v333_v0 = vadd.f32 %v457_v62, %v269_v58  ;;  %v336_v9 = vmax.f32 %v322_v4, 0.0 }
 0x272   :  { %v324_v2 = vpop.f32.mrf.mxu0 }
 0x273   :  { %v339_v5 = vmax.f32 %v333_v0, 0.0  ;;  %v325_v6 = vadd.f32 %v324_v2, %v259_v1 }
 0x275   :  { %v342_v7 = vpack.c.bf16 %v339_v5, %v338_v3  ;;  %v337_v8 = vmax.f32 %v325_v6, 0.0 }
 0x277   :  { %459 = vmatpush3.bf16.msra.mxu1 %v342_v7  ;;  %v341_v10 = vpack.c.bf16 %v337_v8, %v336_v9 }
 0x278   :  { %460 = vmatprep.subr.bf16.mxu1 %v506_v56 }
 0x27b   :  { %461 = vmatpush3.bf16.msra.mxu1 %v341_v10 }
 0x27e   :  { %463 = vmatmul.mubr.msk.bf16.vlgmr.msra.gmra.mxu1 %vm181_vm1, %v340_v11 }
 0x33e   :  { %v382_v13 = vpop.f32.mrf.mxu1 }
 0x33f   :  { %v383_v14 = vadd.f32 %v382_v13, %v344_v12 }
 0x340   :  { %v464_v15 = vpop.f32.mrf.mxu1 }
 0x341   :  { %v388_v16 = vsub.f32 0.0, %v383_v14 }
 0x342   :  { %v385_v17 = vpop.f32.mrf.mxu1 }
 0x343   :  { %v389_v18 = vmul.f32 1.442695, %v388_v16 }
 0x344   :  { %v465_v19 = vpop.f32.mrf.mxu1 }
 0x345   :  { %479 = vpow2.f32 %v389_v18 }
 0x352   :  { %v480_v20 = vpop.eup %479 }
 0x353   :  { %v391_v21 = vadd.f32 1.0, %v480_v20 }
 0x355   :  { %481 = vrcp.f32 %v391_v21 }
 0x362   :  { %v482_v22 = vpop.eup %481 }
 0x363   :  { %393 = vst [vmem:[#allocation3] sm:$0x1] %v482_v22 }
 0x364   :  { %494 = shalt.err (!%p491_p4)
}
 0x365   :  { %403 = dma.vmem_to_hbm [thread:$0]  %s401_s22, 16, %s639_s9, [#allocation4]  }
 0x366   :  { %503 = dma.done.wait [#allocation4], 16  }
 0x367   :  { %504 = vsyncadd [#allocation4], 4294967280 }
 0x368   :  { %407 = vsyncpa [#allocation4], 1 }

</bundles_post_ra>
